<compile_context>
chip_gen: v6e
topology: v6e:2x2x1
jax: 0.10.0
libtpu: 0.0.40
codegen_flags: <defaults>
</compile_context>

<pallas_src>
import jax
import jax.numpy as jnp
from jax.experimental import pallas as pl
from jax.experimental.pallas import tpu as pltpu


def _round_up(x, m):
    return (x + m - 1) // m * m


def _mlp_kernel(xT_ref, w1_ref, b1_ref, w2_ref, b2_ref, w3_ref, b3_ref, o_ref):
    # Transposed layout: features on sublanes, batch on lanes.  x/w1/w2/h1 are
    # bf16 (single-pass MXU matmuls); accumulation and bias/ReLU are f32.
    xT = xT_ref[...]                                                     # (13, TB) bf16

    # Linear(13 -> 64) + ReLU   (Dropout: identity in inference)
    h1 = jnp.dot(w1_ref[...], xT, preferred_element_type=jnp.float32)    # (64, TB) f32
    h1 = jnp.maximum(h1 + b1_ref[...], 0.0)
    h1 = h1.astype(jnp.bfloat16)        # halve largest intermediate; bf16 MXU input

    # Linear(64 -> 32) + ReLU   (Dropout: identity in inference)
    h2 = jnp.dot(w2_ref[...], h1, preferred_element_type=jnp.float32)    # (32, TB) f32
    h2 = jnp.maximum(h2 + b2_ref[...], 0.0)

    # Linear(32 -> 1): 4 VPU multiply-accumulates over vreg-aligned 8-sublane
    # chunks, then a single 8-wide XLU sublane fold (keeps the VPU, not the
    # 2-unit XLU, doing most of the work).
    w3 = w3_ref[...]                                                      # (32, 1) f32
    acc = h2[0:8] * w3[0:8]
    acc = acc + h2[8:16] * w3[8:16]
    acc = acc + h2[16:24] * w3[16:24]
    acc = acc + h2[24:32] * w3[24:32]                                     # (8, TB)
    y = jnp.sum(acc, axis=0, keepdims=True) + b3_ref[...]                 # (1, TB)

    o_ref[...] = y.astype(o_ref.dtype)                                    # lane-dense


def regression_model_forward(x, params, *, block_b=32768, x_dtype=jnp.bfloat16,
                             out_dtype=jnp.float32, x_is_transposed=False):
    """Fused forward pass.

    x:      (B, 13) float32 (PyTorch layout), or (13, B) if x_is_transposed
            (lets an upstream producer skip the transpose+cast pre-pass).
    params: dict with PyTorch-layout weights:
              w1 (64, 13), b1 (64, 1), w2 (32, 64), b2 (32, 1),
              w3 (32, 1)  [= torch weight (1, 32) transposed], b3 (1, 1).
    Returns (B, 1) in out_dtype.
    """
    w1, b1, w2, b2, w3, b3 = (params["w1"], params["b1"], params["w2"],
                              params["b2"], params["w3"], params["b3"])
    if x_is_transposed:
        F, B = x.shape
    else:
        B, F = x.shape
    assert F == 13, F

    if B == 0:                                   # degenerate-batch guard
        return jnp.zeros((0, 1), out_dtype)

    # Batch tile: multiple of 128 (lane-dense), capped by block_b.  If one
    # tile would cover the whole (non-tiny) batch, split in two so the
    # "parallel" grid axis gives both v7x TensorCores work.
    b128 = _round_up(B, 128)
    tb = min(_round_up(block_b, 128), b128)
    if tb == b128 and b128 >= 256:
        tb = _round_up(pl.cdiv(b128, 2), 128)
    b_pad = _round_up(B, tb)
    num_tiles = b_pad // tb

    # Present x transposed + bf16 to the kernel.  Default path is one fused
    # XLA transpose+convert; pass x_is_transposed=True to skip it entirely.
    xT = x if x_is_transposed else x.T
    xT = xT.astype(x_dtype)                                              # (13, B)
    if b_pad != B:
        xT = jnp.pad(xT, ((0, 0), (0, b_pad - B)))                       # (13, b_pad)

    # Matmul weights in bf16 (single-pass MXU); biases and w3 (VPU path) f32.
    w1 = w1.astype(jnp.bfloat16)
    w2 = w2.astype(jnp.bfloat16)

    const = lambda a: pl.BlockSpec(a.shape, lambda i: (0, 0))            # VMEM-resident

    # ~0.5 KB of live VMEM per batch lane with bf16 x/h1; leave headroom but
    # stay under v7x's 64 MiB per-core physical VMEM.
    vmem_limit = int(min(48 * 1024 * 1024, max(32 * 1024 * 1024, 1280 * tb)))

    flops = int(2 * b_pad * (13 * 64 + 64 * 32 + 32))
    bytes_accessed = int(xT.size * xT.dtype.itemsize
                         + b_pad * jnp.dtype(out_dtype).itemsize
                         + sum(int(a.size) * a.dtype.itemsize
                               for a in (w1, b1, w2, b2, w3, b3)))

    out = pl.pallas_call(
        _mlp_kernel,
        out_shape=jax.ShapeDtypeStruct((1, b_pad), out_dtype),
        grid=(num_tiles,),
        in_specs=[pl.BlockSpec((13, tb), lambda i: (0, i)),              # x^T, streamed
                  const(w1), const(b1), const(w2), const(b2),
                  const(w3), const(b3)],
        out_specs=pl.BlockSpec((1, tb), lambda i: (0, i)),               # lane-dense
        compiler_params=pltpu.CompilerParams(
            dimension_semantics=("parallel",),
            vmem_limit_bytes=vmem_limit),
        cost_estimate=pl.CostEstimate(flops=flops, transcendentals=0,
                                      bytes_accessed=bytes_accessed),
    )(xT, w1, b1, w2, b2, w3, b3)

    # (1, b_pad) -> (B, 1), dropping batch padding.
    return out[0, :B].reshape(B, 1).astype(out_dtype)


def init_params(key):
    """Deterministic init matching nn.Linear default U(-1/sqrt(fan_in), +)."""
    def linear(key, fan_in, fan_out):
        k_w, k_b = jax.random.split(key)
        bound = 1.0 / (fan_in ** 0.5)
        w = jax.random.uniform(k_w, (fan_out, fan_in), jnp.float32, -bound, bound)
        b = jax.random.uniform(k_b, (fan_out, 1), jnp.float32, -bound, bound)
        return w, b

    k1, k2, k3 = jax.random.split(key, 3)
    w1, b1 = linear(k1, 13, 64)          # (64, 13), (64, 1)
    w2, b2 = linear(k2, 64, 32)          # (32, 64), (32, 1)
    w3, b3 = linear(k3, 32, 1)           # (1, 32),  (1, 1)
    return {"w1": w1, "b1": b1, "w2": w2, "b2": b2,
            "w3": w3.T,                  # stored as a (32, 1) column
            "b3": b3}


def _reference(x, p, x_dtype=jnp.bfloat16):
    # Mirrors the kernel's quantization (bf16 x / w1 / w2 / h1, f32 accum) so
    # the only residual difference is MXU vs. XLA matmul rounding.
    f32 = jnp.float32
    xT = x.T.astype(x_dtype).astype(f32)                                 # (13, B)
    w1 = p["w1"].astype(jnp.bfloat16).astype(f32)
    w2 = p["w2"].astype(jnp.bfloat16).astype(f32)
    h1 = jnp.maximum(w1 @ xT + p["b1"], 0.0)
    h1 = h1.astype(jnp.bfloat16).astype(f32)
    h2 = jnp.maximum(w2 @ h1 + p["b2"], 0.0)
    y = jnp.sum(h2 * p["w3"], axis=0, keepdims=True) + p["b3"]           # (1, B)
    return y.T                                                           # (B, 1)


if __name__ == "__main__":
    key = jax.random.PRNGKey(0)
    k_x, k_p = jax.random.split(key)

    batch = 8
    x = jax.random.normal(k_x, (batch, 13), jnp.float32)
    params = init_params(k_p)

    y = regression_model_forward(x, params)
    y = jax.block_until_ready(y)

    y_ref = _reference(x, params)
    assert y.shape == (batch, 1), y.shape
    # Tolerance covers MXU vs. XLA matmul pass differences on bf16 inputs.
    assert jnp.allclose(y, y_ref, atol=2e-2, rtol=2e-2), "mismatch vs reference"

    print("KERNEL_OK")
</pallas_src>

<mosaic_0001>
module attributes {stable_mosaic.version = 11 : i64} {
  func.func @_mlp_kernel(%arg0: i32, %arg1: memref<13x128xbf16, #tpu.memory_space<vmem>>, %arg2: memref<64x13xbf16, #tpu.memory_space<vmem>>, %arg3: memref<64x1xf32, #tpu.memory_space<vmem>>, %arg4: memref<32x64xbf16, #tpu.memory_space<vmem>>, %arg5: memref<32x1xf32, #tpu.memory_space<vmem>>, %arg6: memref<32x1xf32, #tpu.memory_space<vmem>>, %arg7: memref<1x1xf32, #tpu.memory_space<vmem>>, %arg8: memref<1x128xf32, #tpu.memory_space<vmem>>) attributes {dimension_semantics = [#tpu.dimension_semantics<parallel>], iteration_bounds = array<i64: 1>, scalar_prefetch = 0 : i64, scratch_operands = 0 : i64, tpu.core_type = #tpu.core_type<tc>, window_params = [{transform_indices = @transform_0, window_bounds = array<i64: 13, 128>}, {pipeline_mode = #tpu.pipeline_mode<synchronous>, transform_indices = @transform_1, window_bounds = array<i64: 64, 13>}, {pipeline_mode = #tpu.pipeline_mode<synchronous>, transform_indices = @transform_2, window_bounds = array<i64: 64, 1>}, {pipeline_mode = #tpu.pipeline_mode<synchronous>, transform_indices = @transform_3, window_bounds = array<i64: 32, 64>}, {pipeline_mode = #tpu.pipeline_mode<synchronous>, transform_indices = @transform_4, window_bounds = array<i64: 32, 1>}, {pipeline_mode = #tpu.pipeline_mode<synchronous>, transform_indices = @transform_5, window_bounds = array<i64: 32, 1>}, {pipeline_mode = #tpu.pipeline_mode<synchronous>, transform_indices = @transform_6, window_bounds = array<i64: 1, 1>}, {transform_indices = @transform_7, window_bounds = array<i64: 1, 128>}]} {
    %c0 = arith.constant 0 : index
    %c0_0 = arith.constant 0 : index
    %0 = vector.load %arg1[%c0, %c0_0] : memref<13x128xbf16, #tpu.memory_space<vmem>>, vector<13x128xbf16>
    %c0_1 = arith.constant 0 : index
    %c0_2 = arith.constant 0 : index
    %1 = vector.load %arg2[%c0_1, %c0_2] : memref<64x13xbf16, #tpu.memory_space<vmem>>, vector<64x13xbf16>
    %cst = arith.constant dense<0.000000e+00> : vector<64x128xf32>
    %2 = tpu.matmul %1, %0, %cst {dimension_numbers = #tpu.dot_dimension_numbers<[1], [0], [0], [1], [0, 0, 1, 1], [], []>} : vector<64x13xbf16>, vector<13x128xbf16>, vector<64x128xf32> -> vector<64x128xf32>
    %c0_3 = arith.constant 0 : index
    %c0_4 = arith.constant 0 : index
    %3 = vector.load %arg3[%c0_3, %c0_4] : memref<64x1xf32, #tpu.memory_space<vmem>>, vector<64x1xf32>
    %4 = vector.broadcast %3 : vector<64x1xf32> to vector<64x128xf32>
    %5 = arith.addf %2, %4 : vector<64x128xf32>
    %cst_5 = arith.constant 0.000000e+00 : f32
    %6 = vector.broadcast %cst_5 : f32 to vector<64x128xf32>
    %7 = arith.maximumf %5, %6 : vector<64x128xf32>
    %8 = arith.truncf %7 : vector<64x128xf32> to vector<64x128xbf16>
    %c0_6 = arith.constant 0 : index
    %c0_7 = arith.constant 0 : index
    %9 = vector.load %arg4[%c0_6, %c0_7] : memref<32x64xbf16, #tpu.memory_space<vmem>>, vector<32x64xbf16>
    %cst_8 = arith.constant dense<0.000000e+00> : vector<32x128xf32>
    %10 = tpu.matmul %9, %8, %cst_8 {dimension_numbers = #tpu.dot_dimension_numbers<[1], [0], [0], [1], [0, 0, 1, 1], [], []>} : vector<32x64xbf16>, vector<64x128xbf16>, vector<32x128xf32> -> vector<32x128xf32>
    %c0_9 = arith.constant 0 : index
    %c0_10 = arith.constant 0 : index
    %11 = vector.load %arg5[%c0_9, %c0_10] : memref<32x1xf32, #tpu.memory_space<vmem>>, vector<32x1xf32>
    %12 = vector.broadcast %11 : vector<32x1xf32> to vector<32x128xf32>
    %13 = arith.addf %10, %12 : vector<32x128xf32>
    %cst_11 = arith.constant 0.000000e+00 : f32
    %14 = vector.broadcast %cst_11 : f32 to vector<32x128xf32>
    %15 = arith.maximumf %13, %14 : vector<32x128xf32>
    %c0_12 = arith.constant 0 : index
    %c0_13 = arith.constant 0 : index
    %16 = vector.load %arg6[%c0_12, %c0_13] : memref<32x1xf32, #tpu.memory_space<vmem>>, vector<32x1xf32>
    %17 = vector.extract_strided_slice %15 {offsets = [0, 0], sizes = [8, 128], strides = [1, 1]} : vector<32x128xf32> to vector<8x128xf32>
    %18 = vector.extract_strided_slice %16 {offsets = [0, 0], sizes = [8, 1], strides = [1, 1]} : vector<32x1xf32> to vector<8x1xf32>
    %19 = vector.broadcast %18 : vector<8x1xf32> to vector<8x128xf32>
    %20 = arith.mulf %17, %19 : vector<8x128xf32>
    %21 = vector.extract_strided_slice %15 {offsets = [8, 0], sizes = [8, 128], strides = [1, 1]} : vector<32x128xf32> to vector<8x128xf32>
    %22 = vector.extract_strided_slice %16 {offsets = [8, 0], sizes = [8, 1], strides = [1, 1]} : vector<32x1xf32> to vector<8x1xf32>
    %23 = vector.broadcast %22 : vector<8x1xf32> to vector<8x128xf32>
    %24 = arith.mulf %21, %23 : vector<8x128xf32>
    %25 = arith.addf %20, %24 : vector<8x128xf32>
    %26 = vector.extract_strided_slice %15 {offsets = [16, 0], sizes = [8, 128], strides = [1, 1]} : vector<32x128xf32> to vector<8x128xf32>
    %27 = vector.extract_strided_slice %16 {offsets = [16, 0], sizes = [8, 1], strides = [1, 1]} : vector<32x1xf32> to vector<8x1xf32>
    %28 = vector.broadcast %27 : vector<8x1xf32> to vector<8x128xf32>
    %29 = arith.mulf %26, %28 : vector<8x128xf32>
    %30 = arith.addf %25, %29 : vector<8x128xf32>
    %31 = vector.extract_strided_slice %15 {offsets = [24, 0], sizes = [8, 128], strides = [1, 1]} : vector<32x128xf32> to vector<8x128xf32>
    %32 = vector.extract_strided_slice %16 {offsets = [24, 0], sizes = [8, 1], strides = [1, 1]} : vector<32x1xf32> to vector<8x1xf32>
    %33 = vector.broadcast %32 : vector<8x1xf32> to vector<8x128xf32>
    %34 = arith.mulf %31, %33 : vector<8x128xf32>
    %35 = arith.addf %30, %34 : vector<8x128xf32>
    %cst_14 = arith.constant dense<0.000000e+00> : vector<128xf32>
    %36 = vector.multi_reduction <add>, %35, %cst_14 [0] : vector<8x128xf32> to vector<128xf32>
    %37 = vector.shape_cast %36 : vector<128xf32> to vector<1x128xf32>
    %c0_15 = arith.constant 0 : index
    %c0_16 = arith.constant 0 : index
    %38 = vector.load %arg7[%c0_15, %c0_16] : memref<1x1xf32, #tpu.memory_space<vmem>>, vector<1x1xf32>
    %39 = vector.broadcast %38 : vector<1x1xf32> to vector<1x128xf32>
    %40 = arith.addf %37, %39 : vector<1x128xf32>
    %c0_17 = arith.constant 0 : index
    %c0_18 = arith.constant 0 : index
    %41 = vector.load %arg8[%c0_17, %c0_18] : memref<1x128xf32, #tpu.memory_space<vmem>>, vector<1x128xf32>
    tpu.vector_store %arg8[%c0_17, %c0_18], %40 {strides = array<i32>} : memref<1x128xf32, #tpu.memory_space<vmem>>, vector<1x128xf32>,
    return
  }
  func.func @transform_0(%arg0: i32) -> (i32, i32) {
    %c0_i32 = arith.constant 0 : i32
    %c0_i32_0 = arith.constant 0 : i32
    return %c0_i32, %arg0 : i32, i32
  }
  func.func @transform_1(%arg0: i32) -> (i32, i32) {
    %c0_i32 = arith.constant 0 : i32
    %c0_i32_0 = arith.constant 0 : i32
    %c0_i32_1 = arith.constant 0 : i32
    return %c0_i32, %c0_i32_0 : i32, i32
  }
  func.func @transform_2(%arg0: i32) -> (i32, i32) {
    %c0_i32 = arith.constant 0 : i32
    %c0_i32_0 = arith.constant 0 : i32
    %c0_i32_1 = arith.constant 0 : i32
    return %c0_i32, %c0_i32_0 : i32, i32
  }
  func.func @transform_3(%arg0: i32) -> (i32, i32) {
    %c0_i32 = arith.constant 0 : i32
    %c0_i32_0 = arith.constant 0 : i32
    %c0_i32_1 = arith.constant 0 : i32
    return %c0_i32, %c0_i32_0 : i32, i32
  }
  func.func @transform_4(%arg0: i32) -> (i32, i32) {
    %c0_i32 = arith.constant 0 : i32
    %c0_i32_0 = arith.constant 0 : i32
    %c0_i32_1 = arith.constant 0 : i32
    return %c0_i32, %c0_i32_0 : i32, i32
  }
  func.func @transform_5(%arg0: i32) -> (i32, i32) {
    %c0_i32 = arith.constant 0 : i32
    %c0_i32_0 = arith.constant 0 : i32
    %c0_i32_1 = arith.constant 0 : i32
    return %c0_i32, %c0_i32_0 : i32, i32
  }
  func.func @transform_6(%arg0: i32) -> (i32, i32) {
    %c0_i32 = arith.constant 0 : i32
    %c0_i32_0 = arith.constant 0 : i32
    %c0_i32_1 = arith.constant 0 : i32
    return %c0_i32, %c0_i32_0 : i32, i32
  }
  func.func @transform_7(%arg0: i32) -> (i32, i32) {
    %c0_i32 = arith.constant 0 : i32
    %c0_i32_0 = arith.constant 0 : i32
    return %c0_i32, %arg0 : i32, i32
  }
}

</mosaic_0001>

<bundles_post_ra>
// kernel: tpu_custom_call.1
= control target key start
LH: loop header
LB: loop body
LE: loop exit
PB: predicated region body
PF: predicated region fallthrough
CT: control target
= control target key end

     0   :  { %s575_s0 = inlined_call_operand.vmem [shape: bf16[13,128], index: 0, kind: input, shape index: {}]   ;;  %s576_s1 = inlined_call_operand.vmem [shape: bf16[64,13], index: 1, kind: input, shape index: {}]   ;;  %s577_s2 = inlined_call_operand.vmem [shape: f32[64,1], index: 2, kind: input, shape index: {}]   ;;  %s578_s3 = inlined_call_operand.vmem [shape: bf16[32,64], index: 3, kind: input, shape index: {}]   ;;  %s579_s4 = inlined_call_operand.vmem [shape: f32[32,1], index: 4, kind: input, shape index: {}]   ;;  %s580_s5 = inlined_call_operand.vmem [shape: f32[32,1], index: 5, kind: input, shape index: {}]   ;;  %s581_s6 = inlined_call_operand.<no memory space> [shape: f32[1,1], index: 6, kind: input, shape index: {}]   ;;  %s582_s7 = inlined_call_operand.hbm [shape: f32[1,128], index: 7, kind: output, shape index: {}]  }
   0x1   :  { %v12_v0 = vstv %s581_s6 }
   0x2   :  { %13 = vst [vmem:[#allocation2] sm:$0x1] %v12_v0 }
   0x3   :  { %v422_v1 = vld [vmem:[%s575_s0] sm:$0x7f]   ;;  %vm126_vm0 = vcmask 1045504   ;;  %vm127_vm1 = vcmask 1046528   ;;  %v451_v3 = vmov 65535   ;;  %vm113_vm2 = vcmask 105472  }
   0x4   :  { %v423_v2 = vld [vmem:[%s576_s1] sm:$0xff]   ;;  %v128_v4 = vsel %vm126_vm0, 4294967295, %v451_v3  ;;  %v452_v7 = vmov 0   ;;  %v46_v8 = vld [vmem:[%s577_s2 + $0x30] sm:$0xff]  ;;  %v424_v9 = vld [vmem:[%s576_s1 + $0x8] sm:$0xff]  }
   0x5   :  { %v129_v5 = vsel %vm127_vm1, %v128_v4, 0  ;;  %397 = vmatprep.mubr.msk.bf16.mxu0 %vm113_vm2, %v423_v2  ;;  %420 = vset.pattern.permute.xlu0 %v452_v7  ;;  %v44_v10 = vld [vmem:[%s577_s2 + $0x20] sm:$0xff]  ;;  %v425_v11 = vld [vmem:[%s576_s1 + $0x10] sm:$0xff]   ;;  %v47_v12 = vld [vmem:[%s577_s2 + $0x38] sm:$0xff] }
   0x6   :  { %v131_v6 = vand.u32 %v422_v1, %v129_v5  ;;  %421 = vset.pattern.permute.xlu1 %v452_v7  ;;  %80 = vperm.xlu0 %420, %v46_v8   ;;  %v45_v13 = vld [vmem:[%s577_s2 + $0x28] sm:$0xff]  ;;  %v42_v14 = vld [vmem:[%s577_s2 + $0x10] sm:$0xff]  ;;  %v43_v15 = vld [vmem:[%s577_s2 + $0x18] sm:$0xff] }
   0x7   :  { %70 = vperm.xlu1 %421, %v44_v10  }
   0x8   :  { %395 = vmatprep.subr.bf16.mxu0 %v131_v6 }
   0x9   :  { %396 = vmatpush3.bf16.msra.mxu0 %v131_v6 }
   0xa   :  { %85 = vperm.xlu0 %420, %v47_v12  }
   0xb   :  { %75 = vperm.xlu1 %421, %v45_v13  }
   0xc   :  { %398 = vmatmul.mubr.msk.bf16.vlgmr.msra.gmra.mxu0 %vm113_vm2, %v424_v9 }
   0xd   :  { %401 = vmatprep.mubr.msk.bf16.mxu0 %vm113_vm2, %v425_v11 }
   0xe   :  { %14 = vsyncpa [#allocation4], 0  ;;  %v426_v16 = vld [vmem:[%s576_s1 + $0x18] sm:$0xff]   ;;  %60 = vperm.xlu0 %420, %v42_v14   ;;  %v40_v17 = vld [vmem:[%s577_s2] sm:$0xff]  ;;  %vm248_vm3 = vcmask 523264  }
   0xf   :  { %65 = vperm.xlu1 %421, %v43_v15   ;;  %v41_v18 = vld [vmem:[%s577_s2 + $0x8] sm:$0xff]  ;;  %v214_v19 = vld [vmem:[%s579_s4] sm:$0xff]  ;;  %v216_v21 = vld [vmem:[%s579_s4 + $0x10] sm:$0xff] }
  0x10   :  { %v215_v20 = vld [vmem:[%s579_s4 + $0x8] sm:$0xff]  ;;  %v217_v22 = vld [vmem:[%s579_s4 + $0x18] sm:$0xff]  ;;  %v308_v23 = vld [vmem:[%s580_s5] sm:$0xff] }
  0x11   :  { %v309_v24 = vld [vmem:[%s580_s5 + $0x8] sm:$0xff]  ;;  %v310_v25 = vld [vmem:[%s580_s5 + $0x10] sm:$0xff]  ;;  %v311_v26 = vld [vmem:[%s580_s5 + $0x18] sm:$0xff] }
  0x12   :  { %50 = vperm.xlu0 %420, %v40_v17   ;;  %v345_v27 = vld [vmem:[#allocation2] sm:$0x1]  ;;  %v428_v1 = vld [vmem:[%s578_s3 + $0x8] sm:$0xff]  }
  0x13   :  { %55 = vperm.xlu1 %421, %v41_v18   ;;  %v427_v28 = vld [vmem:[%s578_s3] sm:$0xff]   ;;  %s453_s3 = smov [#allocation3]  }
  0x14   :  { %402 = vmatmul.mubr.msk.bf16.gmra.mxu0 %vm113_vm2, %v426_v16  ;;  %413 = vmatprep.mubr.msk.bf16.mxu1 %vm248_vm3, %v427_v28  ;;  %v351_v28 = vlaneseq  ;;  %s363_s18 = sshll.u32 %s453_s3, 4  ;;  %s364_s18 = int_to_ptr.vmem [resolvable:$true] %s363_s18 }
  0x15   :  { %s429_s19 = scalar_lea.vmem %s364_s18, 16  ;;  %s433_s20 = scalar_lea.vmem %s364_s18, 32 }
  0x16   :  { %220 = vperm.xlu0 %420, %v214_v19   ;;  %p430_p0 = scmp.ne.s32.totalorder %s364_s18, %s429_s19  ;;  %p434_p1 = scmp.lt.s32.totalorder %s364_s18, %s364_s18 }
  0x17   :  { %225 = vperm.xlu1 %421, %v215_v20   ;;  %p435_p2 = scmp.lt.s32.totalorder %s433_s20, %s429_s19 }
  0x19   :  { %p436_p3 = por %p435_p2, %p434_p1 }
  0x1a   :  { %230 = vperm.xlu0 %420, %v216_v21  }
  0x1b   :  { %235 = vperm.xlu1 %421, %v217_v22   ;;  %p437_p4 = pnand %p436_p3, %p430_p0 }
  0x1e   :  { %314 = vperm.xlu0 %420, %v308_v23  }
  0x1f   :  { %320 = vperm.xlu1 %421, %v309_v24  }
  0x22   :  { %327 = vperm.xlu0 %420, %v310_v25  }
  0x23   :  { %334 = vperm.xlu1 %421, %v311_v26  }
  0x26   :  { %348 = vperm.xlu0 %420, %v345_v27  }
  0x81   :  { %v81_v31 = vpop.permute.xlu0 %80 }
  0x82   :  { %v71_v29 = vpop.permute.xlu1 %70 }
  0x85   :  { %v86_v36 = vpop.permute.xlu0 %85 }
  0x86   :  { %v76_v34 = vpop.permute.xlu1 %75 }
  0x89   :  { %v61_v44 = vpop.permute.xlu0 %60 }
  0x8a   :  { %v66_v40 = vpop.permute.xlu1 %65 }
  0x8d   :  { %v51_v58 = vpop.permute.xlu0 %50 }
  0x8e   :  { %v56_v54 = vpop.permute.xlu1 %55 }
  0x91   :  { %v221_v2 = vpop.permute.xlu0 %220 }
  0x92   :  { %v226_v3 = vpop.permute.xlu1 %225 }
  0x95   :  { %v231_v4 = vpop.permute.xlu0 %230 }
  0x96   :  { %v236_v6 = vpop.permute.xlu1 %235 }
  0x99   :  { %v315_v11 = vpop.permute.xlu0 %314 }
  0x9a   :  { %v321_v16 = vpop.permute.xlu1 %320 }
  0x9d   :  { %v328_v22 = vpop.permute.xlu0 %327 }
  0x9e   :  { %v335_v25 = vpop.permute.xlu1 %334 }
  0xcc   :  { %v399_v30 = vpop.f32.mrf.mxu0 }
  0xcd   :  { %v176_v50 = vadd.f32 %v399_v30, %v61_v44 }
  0xce   :  { %v167_v32 = vpop.f32.mrf.mxu0 }
  0xcf   :  { %v200_v59 = vmax.f32 %v176_v50, 0.0  ;;  %v168_v60 = vadd.f32 %v167_v32, %v51_v58 }
  0xd0   :  { %v400_v33 = vpop.f32.mrf.mxu0 }
  0xd1   :  { %v179_v46 = vadd.f32 %v400_v33, %v66_v40  ;;  %v198_v63 = vmax.f32 %v168_v60, 0.0 }
  0xd2   :  { %v170_v35 = vpop.f32.mrf.mxu0 }
  0xd3   :  { %v201_v55 = vmax.f32 %v179_v46, 0.0  ;;  %v171_v56 = vadd.f32 %v170_v35, %v56_v54 }
  0xd4   :  { %v403_v37 = vpop.f32.mrf.mxu0 }
  0xd5   :  { %v192_v39 = vadd.f32 %v403_v37, %v81_v31  ;;  %v207_v61 = vpack.c.bf16 %v201_v55, %v200_v59  ;;  %v199_v62 = vmax.f32 %v171_v56, 0.0  ;;  %v352_v31 = vshrl.u32 %v351_v28, 7 }
  0xd6   :  { %v183_v38 = vpop.f32.mrf.mxu0 }
  0xd7   :  { %v184_v42 = vadd.f32 %v183_v38, %v71_v29  ;;  %v204_v47 = vmax.f32 %v192_v39, 0.0  ;;  %v206_v0 = vpack.c.bf16 %v199_v62, %v198_v63 }
  0xd8   :  { %v404_v41 = vpop.f32.mrf.mxu0 }
  0xd9   :  { %v195_v43 = vadd.f32 %v404_v41, %v86_v36  ;;  %v202_v51 = vmax.f32 %v184_v42, 0.0  ;;  %v349_v36 = vpop.permute.xlu0 %348 }
  0xda   :  { %v186_v45 = vpop.f32.mrf.mxu0 }
  0xdb   :  { %v205_v48 = vmax.f32 %v195_v43, 0.0  ;;  %v187_v49 = vadd.f32 %v186_v45, %v76_v34  ;;  %v353_v34 = vsub.s32 0, %v352_v31 }
  0xdd   :  { %v203_v52 = vmax.f32 %v187_v49, 0.0  ;;  %v209_v53 = vpack.c.bf16 %v205_v48, %v204_v47  ;;  %v354_v38 = vrot.slane %v349_v36, %v353_v34 }
  0xdf   :  { %v208_v57 = vpack.c.bf16 %v203_v52, %v202_v51  ;;  %405 = vmatprep.subr.bf16.mxu1 %v209_v53 }
  0xe0   :  { %406 = vmatpush3.bf16.msra.mxu1 %v209_v53 }
  0xe1   :  { %407 = vmatprep.subr.bf16.mxu1 %v208_v57 }
  0xe4   :  { %408 = vmatpush3.bf16.msra.mxu1 %v208_v57 }
  0xe5   :  { %409 = vmatprep.subr.bf16.mxu1 %v207_v61 }
  0xe8   :  { %410 = vmatpush3.bf16.msra.mxu1 %v207_v61 }
  0xe9   :  { %411 = vmatprep.subr.bf16.mxu1 %v206_v0 }
  0xec   :  { %412 = vmatpush3.bf16.msra.mxu1 %v206_v0 }
  0xef   :  { %414 = vmatmul.mubr.msk.bf16.vlgmr.msra.gmra.mxu1 %vm248_vm3, %v428_v1 }
 0x1af   :  { %v415_v5 = vpop.f32.mrf.mxu1 }
 0x1b0   :  { %v298_v10 = vadd.f32 %v415_v5, %v231_v4 }
 0x1b1   :  { %v289_v7 = vpop.f32.mrf.mxu1 }
 0x1b2   :  { %v290_v8 = vadd.f32 %v289_v7, %v221_v2  ;;  %v306_v17 = vmax.f32 %v298_v10, 0.0 }
 0x1b3   :  { %v416_v9 = vpop.f32.mrf.mxu1 }
 0x1b4   :  { %v304_v13 = vmax.f32 %v290_v8, 0.0  ;;  %v301_v14 = vadd.f32 %v416_v9, %v236_v6  ;;  %v330_v23 = vmul.f32 %v328_v22, %v306_v17 }
 0x1b5   :  { %v292_v12 = vpop.f32.mrf.mxu1 }
 0x1b6   :  { %v293_v15 = vadd.f32 %v292_v12, %v226_v3  ;;  %v317_v19 = vmul.f32 %v315_v11, %v304_v13  ;;  %v307_v20 = vmax.f32 %v301_v14, 0.0 }
 0x1b8   :  { %v305_v18 = vmax.f32 %v293_v15, 0.0  ;;  %v337_v26 = vmul.f32 %v335_v25, %v307_v20 }
 0x1ba   :  { %v323_v21 = vmul.f32 %v321_v16, %v305_v18 }
 0x1bc   :  { %v324_v24 = vadd.f32 %v323_v21, %v317_v19 }
 0x1be   :  { %v331_v27 = vadd.f32 %v330_v23, %v324_v24 }
 0x1c0   :  { %v338_v29 = vadd.f32 %v337_v26, %v331_v27 }
 0x1c2   :  { %v339_v30 = vrot.slane %v338_v29, 4 }
 0x1c4   :  { %v340_v32 = vadd.f32 %v339_v30, %v338_v29 }
 0x1c6   :  { %v341_v33 = vrot.slane %v340_v32, 2 }
 0x1c8   :  { %v342_v35 = vadd.f32 %v341_v33, %v340_v32 }
 0x1ca   :  { %v343_v37 = vrot.slane %v342_v35, 1 }
 0x1cc   :  { %v344_v39 = vadd.f32 %v343_v37, %v342_v35 }
 0x1ce   :  { %v355_v40 = vadd.f32 %v354_v38, %v344_v39 }
 0x1d0   :  { %356 = vst [vmem:[#allocation3] sm:$0x1] %v355_v40 }
 0x1d1   :  { %440 = shalt.err (!%p437_p4)
}
 0x1d2   :  { %366 = dma.vmem_to_hbm [thread:$0]  %s364_s18, 16, %s582_s7, [#allocation4]  }
 0x1d3   :  { %449 = dma.done.wait [#allocation4], 16  }
 0x1d4   :  { %450 = vsyncadd [#allocation4], 4294967280 }
 0x1d5   :  { %370 = vsyncpa [#allocation4], 1 }

</bundles_post_ra>
